<compile_context>
chip_gen: v7x
topology: tpu7x:2x2x1
jax: 0.10.0
libtpu: 0.0.40
codegen_flags: <defaults>
</compile_context>

<pallas_src>
import functools

import jax
import jax.numpy as jnp
from jax.experimental import pallas as pl
from jax.experimental.pallas import tpu as pltpu


def _round_up(x, m):
    return (x + m - 1) // m * m


def _tpu_generation():
    """Best-effort TPU generation (2..7). 0 if unknown."""
    try:
        kind = jax.devices()[0].device_kind.lower()
    except Exception:
        return 0
    if "trillium" in kind or "v6" in kind:
        return 6
    if "v7" in kind or "7x" in kind:
        return 7
    for g in (5, 4, 3, 2):
        if f"v{g}" in kind:
            return g
    return 0


def _grad_l1_kernel(y_ref, mask_h_ref, mask_w_ref, acc_ref, *,
                    shift_h, shift_w, compute_dtype):
    """One grid step over a (tbc, Lp) lane-dense slab of flattened images.

    y_ref:      (tbc, Lp) input slab, native dtype (f32 / bf16).
    mask_h_ref: (1, Lp)   0/1 validity mask for the H-direction diff.
    mask_w_ref: (1, Lp)   0/1 validity mask for the W-direction diff.
    acc_ref:    (1, 2, 128) f32 output block, revisited across the inner grid
                axis -> VMEM-resident accumulator (row 0 = sum|dH|,
                row 1 = sum|dW|, broadcast over all 128 lanes).
    """
    @pl.when(pl.program_id(1) == 0)
    def _init():
        acc_ref[...] = jnp.zeros_like(acc_ref)

    y = y_ref[...]
    if y.dtype != compute_dtype:
        y = y.astype(compute_dtype)

    # rolled_*[i] == y[(i + d) % Lp]  (jnp.roll semantics, shift = Lp - d);
    # wraparound / zero-pad positions are removed by the masks.
    rolled_h = pltpu.roll(y, shift=shift_h, axis=1)
    rolled_w = pltpu.roll(y, shift=shift_w, axis=1)

    dh = jnp.abs(rolled_h - y) * mask_h_ref[...]
    dw = jnp.abs(rolled_w - y) * mask_w_ref[...]

    # Reduce the whole slab to two scalars; accumulation always in f32.
    s_h = jnp.sum(jnp.sum(dh, axis=0, keepdims=True, dtype=jnp.float32))
    s_w = jnp.sum(jnp.sum(dw, axis=0, keepdims=True, dtype=jnp.float32))

    sel = jax.lax.broadcasted_iota(jnp.int32, acc_ref.shape, 1)
    acc_ref[...] += jnp.where(sel == 0, s_h, s_w)


def grad_loss_l1(y_pred, *, dist=1, n_split=None, tile_bytes=None):
    """Pallas implementation of Grad(penalty=['l1'], ndims=2)(y_pred).

    y_pred: (B, C, H, W) array (NCHW like the PyTorch module). Returns f32 scalar.
    """
    B, C, H, W = y_pred.shape
    assert H > dist and W > dist, "spatial dims must exceed dist"

    gen = _tpu_generation()

    # ---- dtype policy -------------------------------------------------------
    if y_pred.dtype not in (jnp.float32, jnp.bfloat16):
        y_pred = y_pred.astype(jnp.float32)
    in_dtype = y_pred.dtype
    # bf16 elementwise math only on chips with a bf16 VPU (v6e / v7x).
    compute_dtype = (jnp.bfloat16
                     if (in_dtype == jnp.bfloat16 and gen >= 6)
                     else jnp.float32)

    # ---- lane-dense flattening ---------------------------------------------
    BC = B * C
    L = H * W
    Lp = _round_up(L, 128)                    # lane-dim zero padding

    # ---- tiling over the fused batch*channel axis (no halo needed) ---------
    in_item = jnp.dtype(in_dtype).itemsize
    comp_item = jnp.dtype(compute_dtype).itemsize
    row_in_bytes = Lp * in_item
    # conservative per-row VMEM cost: double-buffered input + ~6 f32-sized temps
    row_cost = 2 * row_in_bytes + 6 * Lp * 4

    if gen >= 7 or gen == 0:
        vmem_budget, vmem_cap = 40 << 20, 56 << 20          # v7x: 64 MiB physical
        default_tile = (8 << 20) if gen >= 7 else (4 << 20)
    else:
        vmem_budget, vmem_cap = 72 << 20, 100 << 20          # v5e/v6e: 128 MiB physical
        default_tile = 4 << 20
    if tile_bytes is None:
        tile_bytes = default_tile

    BC8 = _round_up(BC, 8)
    tbc = min(max(8, tile_bytes // max(row_in_bytes, 1) // 8 * 8),
              max(8, vmem_budget // max(row_cost, 1) // 8 * 8),
              BC8)
    # TODO(synk): a single image whose flattened row exceeds the VMEM budget
    # would additionally need tiling of the flat axis with a dist*W halo.

    n_blocks = pl.cdiv(BC8, tbc)
    if n_split is None:
        n_split = 2 if gen >= 7 else 1        # one TensorCore on v5e/v6e, two on v7x
    n_split = max(1, min(n_split, n_blocks))
    blocks_per_split = pl.cdiv(n_blocks, n_split)
    bc_pad = n_split * blocks_per_split * tbc

    y = y_pred.reshape(BC, L)
    if bc_pad != BC or Lp != L:
        # zero padding contributes nothing to the masked |diff| sums
        y = jnp.pad(y, ((0, bc_pad - BC), (0, Lp - L)))

    # ---- validity masks (periodic in the flat index; built once) -----------
    idx = jnp.arange(Lp, dtype=jnp.int32)
    mask_h = (idx < (H - dist) * W).astype(compute_dtype).reshape(1, Lp)
    mask_w = ((idx < L) & ((idx % W) < (W - dist))).astype(compute_dtype).reshape(1, Lp)

    kernel = functools.partial(
        _grad_l1_kernel,
        shift_h=Lp - dist * W, shift_w=Lp - dist, compute_dtype=compute_dtype)

    n_elem = bc_pad * Lp
    cost = pl.CostEstimate(
        flops=8 * n_elem, transcendentals=0,
        bytes_accessed=n_elem * in_item + 2 * Lp * comp_item + n_split * 2 * 128 * 4)

    # leading ("split") axis is sharded across TensorCores only on multi-TC chips
    lead_sem = (pltpu.CORE_PARALLEL
                if (n_split > 1 and gen >= 7) else pltpu.ARBITRARY)
    vmem_limit = int(min(vmem_cap,
                         max(32 << 20,
                             tbc * row_cost + 4 * Lp * comp_item + (2 << 20))))

    acc = pl.pallas_call(
        kernel,
        out_shape=jax.ShapeDtypeStruct((n_split, 2, 128), jnp.float32),
        grid_spec=pltpu.PrefetchScalarGridSpec(
            num_scalar_prefetch=0,
            grid=(n_split, blocks_per_split),
            in_specs=[
                pl.BlockSpec((tbc, Lp),
                             lambda s, i: (s * blocks_per_split + i, 0)),
                pl.BlockSpec((1, Lp), lambda s, i: (0, 0)),   # mask_h (never re-fetched)
                pl.BlockSpec((1, Lp), lambda s, i: (0, 0)),   # mask_w (never re-fetched)
            ],
            out_specs=pl.BlockSpec((1, 2, 128), lambda s, i: (s, 0, 0)),
        ),
        compiler_params=pltpu.CompilerParams(
            dimension_semantics=(lead_sem, pltpu.ARBITRARY),
            vmem_limit_bytes=vmem_limit,
        ),
        cost_estimate=cost,
    )(y, mask_h, mask_w)

    # trivial final reduce + normalization, once, outside the hot loop
    n_h = BC * (H - dist) * W    # element count of the H-direction diff
    n_w = BC * H * (W - dist)    # element count of the W-direction diff
    return 0.5 * (jnp.sum(acc[:, 0, 0]) / n_h + jnp.sum(acc[:, 1, 0]) / n_w)


def grad_loss_l1_ref(y_pred, *, dist=1):
    """Pure-JAX reference (mirrors the PyTorch forward; exact for f32 inputs)."""
    d0 = (y_pred[:, :, dist:, :] - y_pred[:, :, :-dist, :]).astype(jnp.float32)
    d1 = (y_pred[:, :, :, dist:] - y_pred[:, :, :, :-dist]).astype(jnp.float32)
    return 0.5 * (jnp.mean(jnp.abs(d0)) + jnp.mean(jnp.abs(d1)))


if __name__ == "__main__":
    key = jax.random.PRNGKey(0)
    # (NCHW shape, on-wire dtype, forced tile_bytes, forced n_split)
    cases = [
        ((2, 4, 16, 16), jnp.float32, None, None),       # default small flow field
        ((2, 8, 16, 16), jnp.float32, 8 * 1024, 1),      # multi-step accumulation
        ((2, 8, 16, 16), jnp.bfloat16, 4 * 1024, 2),     # bf16 wire + 2 partial splits
        ((1, 2, 24, 20), jnp.float32, None, None),       # unaligned H*W (lane pad + masks)
    ]
    for idx, (shape, dtype, tb, ns) in enumerate(cases):
        k = jax.random.fold_in(key, idx)
        y_pred = jax.random.normal(k, shape, dtype=jnp.float32).astype(dtype)

        loss = jax.block_until_ready(
            grad_loss_l1(y_pred, dist=1, tile_bytes=tb, n_split=ns))
        ref = jax.block_until_ready(grad_loss_l1_ref(y_pred, dist=1))

        tol = 1e-5 if dtype == jnp.float32 else 1e-2
        assert jnp.allclose(loss, ref, rtol=tol, atol=tol), (
            shape, dtype, float(loss), float(ref))

    print("KERNEL_OK")
</pallas_src>

<mosaic_0001>
module attributes {stable_mosaic.version = 11 : i64} {
  func.func @_grad_l1_kernel(%arg0: i32, %arg1: i32, %arg2: memref<8x256xf32, #tpu.memory_space<vmem>>, %arg3: memref<1x256xf32, #tpu.memory_space<vmem>>, %arg4: memref<1x256xf32, #tpu.memory_space<vmem>>, %arg5: memref<1x2x128xf32, #tpu.memory_space<vmem>>) attributes {dimension_semantics = [#tpu.dimension_semantics<arbitrary>, #tpu.dimension_semantics<arbitrary>], iteration_bounds = array<i64: 1, 1>, scalar_prefetch = 0 : i64, scratch_operands = 0 : i64, tpu.core_type = #tpu.core_type<tc>, window_params = [{transform_indices = @transform_0, window_bounds = array<i64: 8, 256>}, {pipeline_mode = #tpu.pipeline_mode<synchronous>, transform_indices = @transform_1, window_bounds = array<i64: 1, 256>}, {pipeline_mode = #tpu.pipeline_mode<synchronous>, transform_indices = @transform_2, window_bounds = array<i64: 1, 256>}, {transform_indices = @transform_3, window_bounds = array<i64: 1, 2, 128>}]} {
    %c0_i32 = arith.constant 0 : i32
    %0 = arith.cmpi eq, %arg1, %c0_i32 : i32
    %1 = arith.extui %0 : i1 to i32
    %c0_i32_0 = arith.constant 0 : i32
    %2 = arith.cmpi ne, %1, %c0_i32_0 : i32
    scf.if %2 {
      %cst_16 = arith.constant 0.000000e+00 : f32
      %37 = vector.broadcast %cst_16 : f32 to vector<1x2x128xf32>
      %c0_17 = arith.constant 0 : index
      %c0_18 = arith.constant 0 : index
      %c0_19 = arith.constant 0 : index
      %38 = vector.load %arg5[%c0_17, %c0_18, %c0_19] : memref<1x2x128xf32, #tpu.memory_space<vmem>>, vector<1x2x128xf32>
      tpu.vector_store %arg5[%c0_17, %c0_18, %c0_19], %37 {strides = array<i32>} : memref<1x2x128xf32, #tpu.memory_space<vmem>>, vector<1x2x128xf32>,
    } else {
    }
    %c0 = arith.constant 0 : index
    %c0_1 = arith.constant 0 : index
    %3 = vector.load %arg2[%c0, %c0_1] : memref<8x256xf32, #tpu.memory_space<vmem>>, vector<8x256xf32>
    %c240_i32 = arith.constant 240 : i32
    %4 = tpu.dynamic_rotate %3 by %c240_i32 dim 1 : vector<8x256xf32>, i32 -> vector<8x256xf32>
    %c255_i32 = arith.constant 255 : i32
    %5 = tpu.dynamic_rotate %3 by %c255_i32 dim 1 : vector<8x256xf32>, i32 -> vector<8x256xf32>
    %6 = arith.subf %4, %3 : vector<8x256xf32>
    %7 = math.absf %6 : vector<8x256xf32>
    %c0_2 = arith.constant 0 : index
    %c0_3 = arith.constant 0 : index
    %8 = vector.load %arg3[%c0_2, %c0_3] : memref<1x256xf32, #tpu.memory_space<vmem>>, vector<1x256xf32>
    %9 = vector.broadcast %8 : vector<1x256xf32> to vector<8x256xf32>
    %10 = arith.mulf %7, %9 : vector<8x256xf32>
    %11 = arith.subf %5, %3 : vector<8x256xf32>
    %12 = math.absf %11 : vector<8x256xf32>
    %c0_4 = arith.constant 0 : index
    %c0_5 = arith.constant 0 : index
    %13 = vector.load %arg4[%c0_4, %c0_5] : memref<1x256xf32, #tpu.memory_space<vmem>>, vector<1x256xf32>
    %14 = vector.broadcast %13 : vector<1x256xf32> to vector<8x256xf32>
    %15 = arith.mulf %12, %14 : vector<8x256xf32>
    %cst = arith.constant dense<0.000000e+00> : vector<256xf32>
    %16 = vector.multi_reduction <add>, %10, %cst [0] : vector<8x256xf32> to vector<256xf32>
    %17 = vector.shape_cast %16 : vector<256xf32> to vector<1x256xf32>
    %18 = vector.shape_cast %17 : vector<1x256xf32> to vector<1x1x256xf32>
    %cst_6 = arith.constant dense<0.000000e+00> : vector<1xf32>
    %19 = vector.multi_reduction <add>, %18, %cst_6 [1, 2] : vector<1x1x256xf32> to vector<1xf32>
    %20 = vector.shape_cast %19 : vector<1xf32> to vector<1x1x1xf32>
    %21 = vector.extract %20[0, 0, 0] : f32 from vector<1x1x1xf32>
    %cst_7 = arith.constant dense<0.000000e+00> : vector<256xf32>
    %22 = vector.multi_reduction <add>, %15, %cst_7 [0] : vector<8x256xf32> to vector<256xf32>
    %23 = vector.shape_cast %22 : vector<256xf32> to vector<1x256xf32>
    %24 = vector.shape_cast %23 : vector<1x256xf32> to vector<1x1x256xf32>
    %cst_8 = arith.constant dense<0.000000e+00> : vector<1xf32>
    %25 = vector.multi_reduction <add>, %24, %cst_8 [1, 2] : vector<1x1x256xf32> to vector<1xf32>
    %26 = vector.shape_cast %25 : vector<1xf32> to vector<1x1x1xf32>
    %27 = vector.extract %26[0, 0, 0] : f32 from vector<1x1x1xf32>
    %28 = tpu.iota {dimensions = array<i32: 1>} : vector<1x2x128xi32>
    %c0_9 = arith.constant 0 : index
    %c0_10 = arith.constant 0 : index
    %c0_11 = arith.constant 0 : index
    %29 = vector.load %arg5[%c0_9, %c0_10, %c0_11] : memref<1x2x128xf32, #tpu.memory_space<vmem>>, vector<1x2x128xf32>
    %c0_i32_12 = arith.constant 0 : i32
    %30 = vector.broadcast %c0_i32_12 : i32 to vector<1x2x128xi32>
    %31 = arith.cmpi eq, %28, %30 : vector<1x2x128xi32>
    %32 = vector.broadcast %21 : f32 to vector<1x2x128xf32>
    %33 = vector.broadcast %27 : f32 to vector<1x2x128xf32>
    %34 = arith.select %31, %32, %33 : vector<1x2x128xi1>, vector<1x2x128xf32>
    %35 = arith.addf %29, %34 : vector<1x2x128xf32>
    %c0_13 = arith.constant 0 : index
    %c0_14 = arith.constant 0 : index
    %c0_15 = arith.constant 0 : index
    %36 = vector.load %arg5[%c0_13, %c0_14, %c0_15] : memref<1x2x128xf32, #tpu.memory_space<vmem>>, vector<1x2x128xf32>
    tpu.vector_store %arg5[%c0_13, %c0_14, %c0_15], %35 {strides = array<i32>} : memref<1x2x128xf32, #tpu.memory_space<vmem>>, vector<1x2x128xf32>,
    return
  }
  func.func @transform_0(%arg0: i32, %arg1: i32) -> (i32, i32) {
    %c1_i32 = arith.constant 1 : i32
    %0 = arith.muli %arg0, %c1_i32 : i32
    %1 = arith.addi %0, %arg1 : i32
    %c0_i32 = arith.constant 0 : i32
    %c0_i32_0 = arith.constant 0 : i32
    return %1, %c0_i32 : i32, i32
  }
  func.func @transform_1(%arg0: i32, %arg1: i32) -> (i32, i32) {
    %c0_i32 = arith.constant 0 : i32
    %c0_i32_0 = arith.constant 0 : i32
    %c0_i32_1 = arith.constant 0 : i32
    return %c0_i32, %c0_i32_0 : i32, i32
  }
  func.func @transform_2(%arg0: i32, %arg1: i32) -> (i32, i32) {
    %c0_i32 = arith.constant 0 : i32
    %c0_i32_0 = arith.constant 0 : i32
    %c0_i32_1 = arith.constant 0 : i32
    return %c0_i32, %c0_i32_0 : i32, i32
  }
  func.func @transform_3(%arg0: i32, %arg1: i32) -> (i32, i32, i32) {
    %c0_i32 = arith.constant 0 : i32
    %c0_i32_0 = arith.constant 0 : i32
    %c0_i32_1 = arith.constant 0 : i32
    return %arg0, %c0_i32, %c0_i32_0 : i32, i32, i32
  }
}

</mosaic_0001>

<bundles_post_ra>
// kernel: tpu_custom_call.1
= control target key start
LH: loop header
LB: loop body
LE: loop exit
PB: predicated region body
PF: predicated region fallthrough
CT: control target
= control target key end

     0   :  { %8 = vsyncpa [#allocation3], 0  ;;  %s281_s0 = inlined_call_operand.hbm [shape: f32[8,256], index: 0, kind: input, shape index: {}]   ;;  %s282_s1 = inlined_call_operand.vmem [shape: f32[1,256], index: 1, kind: input, shape index: {}]   ;;  %s283_s2 = inlined_call_operand.vmem [shape: f32[1,256], index: 2, kind: input, shape index: {}]   ;;  %s284_s3 = inlined_call_operand.hbm [shape: f32[1,2,128], index: 3, kind: output, shape index: {}]  }
   0x1   :  { %9 = vsyncpa [#allocation4], 0  ;;  %s221_s12 = smov [#allocation2]   ;;  %s173_s16 = scalar_lea.hbm %s281_s0, 256 }
   0x2   :  { %s20_s13 = sshll.u32 %s221_s12, 4  ;;  %p174_p0 = scmp.ne.s32.totalorder %s281_s0, %s173_s16  ;;  %s21_s13 = int_to_ptr.vmem [resolvable:$true] %s20_s13 }
   0x3   :  { %p177_p1 = scmp.lt.u32.totalorder %s173_s16, %s281_s0 }
   0x5   :  { %p179_p2 = pnand %p177_p1, %p174_p0 }
   0x7   :  { %182 = shalt.err (!%p179_p2)
}
   0x8   :  { %s183_s21 = scalar_lea.vmem %s21_s13, 256  ;;  %p188_p4 = scmp.lt.s32.totalorder %s21_s13, %s21_s13 }
   0x9   :  { %p184_p3 = scmp.ne.s32.totalorder %s21_s13, %s183_s21  ;;  %p189_p5 = scmp.lt.s32.totalorder %s183_s21, %s183_s21 }
   0xb   :  { %p190_p6 = por %p189_p5, %p188_p4 }
   0xd   :  { %p191_p7 = pnand %p190_p6, %p184_p3 }
   0xf   :  { %194 = shalt.err (!%p191_p7)
}
  0x10   :  { %23 = dma.hbm_to_vmem [thread:$0]  %s281_s0, 256, %s21_s13, [#allocation3]  }
  0x11   :  { %217 = dma.done.wait [#allocation3], 256  }
  0x12   :  { %218 = vsyncadd [#allocation3], 4294967040  ;;  %v222_v0 = vmov 0.0   ;;  %v37_v1 = vld [vmem:[#allocation2] sm:$0xff]  ;;  %s223_s24 = smov 127   ;;  %s224_s25 = smov 112   ;;  %v43_v3 = vlaneseq }
  0x13   :  { %36 = vst [vmem:[#allocation5] sm:$0x3] %v222_v0  ;;  %48 = vrot.lane.b32.xlu1 %v37_v1, %s223_s24  ;;  %39 = vrot.lane.b32.xlu0 %v37_v1, %s224_s25  ;;  %v38_v2 = vld [vmem:[#allocation2 + $0x8] sm:$0xff]  ;;  %v77_v10 = vld [vmem:[%s283_s2] sm:$0x3]  ;;  %vm103_vm2 = vcmask 1040384  }
  0x14   :  { %v258_v4 = vshrl.u32 %v43_v3, 7  ;;  %v44_v5 = vand.u32 127, %v43_v3  ;;  %v59_v11 = vld [vmem:[%s282_s1] sm:$0x3]  ;;  %s225_s29 = smov [#allocation5]  }
  0x15   :  { %s155_s30 = sshll.u32 %s225_s29, 4  ;;  %s156_s30 = int_to_ptr.vmem [resolvable:$true] %s155_s30 }
  0x16   :  { %v63_v8 = vsub.s32 0, %v258_v4  ;;  %v67_v9 = vsub.s32 1, %v258_v4  ;;  %vm52_vm0 = vcmp.lt.s32.totalorder %v44_v5, 127  ;;  %vm45_vm1 = vcmp.lt.s32.totalorder %v44_v5, 112  ;;  %s195_s4 = scalar_lea.vmem %s156_s30, 32  ;;  %p200_p9 = scmp.lt.s32.totalorder %s156_s30, %s156_s30 }
  0x17   :  { %50 = vrot.lane.b32.xlu1 %v38_v2, %s223_s24  ;;  %41 = vrot.lane.b32.xlu0 %v38_v2, %s224_s25  ;;  %vm143_vm3 = vcmp.eq.s32.totalorder %v258_v4, 0  ;;  %p196_p8 = scmp.ne.s32.totalorder %s156_s30, %s195_s4  ;;  %p201_p10 = scmp.lt.s32.totalorder %s195_s4, %s195_s4 }
  0x18   :  { %v82_v12 = vrot.slane %v77_v10, %v63_v8  ;;  %v86_v13 = vrot.slane %v77_v10, %v67_v9  ;;  %v64_v15 = vrot.slane %v59_v11, %v63_v8  ;;  %v68_v25 = vrot.slane %v59_v11, %v67_v9 }
  0x19   :  { %p202_p11 = por %p201_p10, %p200_p9 }
  0x1b   :  { %p203_p12 = pnand %p202_p11, %p196_p8 }
  0x85   :  { %v49_v6 = vpop.permute.xlu1 %48  ;;  %v40_v7 = vpop.permute.xlu0 %39 }
  0x89   :  { %v51_v14 = vpop.permute.xlu1 %50  ;;  %v42_v16 = vpop.permute.xlu0 %41 }
  0x8a   :  { %v53_v17 = vsel %vm52_vm0, %v49_v6, %v51_v14  ;;  %v54_v18 = vsel %vm52_vm0, %v51_v14, %v49_v6  ;;  %v46_v19 = vsel %vm45_vm1, %v40_v7, %v42_v16  ;;  %v47_v20 = vsel %vm45_vm1, %v42_v16, %v40_v7  ;;  %v142_v16 = vld [vmem:[#allocation5] sm:$0x3] }
  0x8b   :  { %v73_v21 = vsub.f32 %v53_v17, %v37_v1  ;;  %v74_v22 = vsub.f32 %v54_v18, %v38_v2  ;;  %v55_v23 = vsub.f32 %v46_v19, %v37_v1  ;;  %v56_v24 = vsub.f32 %v47_v20, %v38_v2 }
  0x8d   :  { %v75_v26 = vand.u32 2147483647, %v73_v21  ;;  %v76_v27 = vand.u32 2147483647, %v74_v22  ;;  %v57_v28 = vand.u32 2147483647, %v55_v23 }
  0x8e   :  { %v58_v29 = vand.u32 2147483647, %v56_v24 }
  0x8f   :  { %v89_v30 = vmul.f32 %v82_v12, %v75_v26  ;;  %v90_v31 = vmul.f32 %v86_v13, %v76_v27  ;;  %v71_v32 = vmul.f32 %v64_v15, %v57_v28 }
  0x90   :  { %v72_v33 = vmul.f32 %v68_v25, %v58_v29 }
  0x91   :  { %v116_v34 = vrot.slane %v89_v30, 4  ;;  %v122_v35 = vrot.slane %v90_v31, 4  ;;  %v91_v36 = vrot.slane %v71_v32, 4 }
  0x92   :  { %v97_v37 = vrot.slane %v72_v33, 4 }
  0x93   :  { %v117_v38 = vadd.f32 %v116_v34, %v89_v30  ;;  %v123_v39 = vadd.f32 %v122_v35, %v90_v31  ;;  %v92_v40 = vadd.f32 %v91_v36, %v71_v32 }
  0x94   :  { %v98_v41 = vadd.f32 %v97_v37, %v72_v33 }
  0x95   :  { %v118_v42 = vrot.slane %v117_v38, 2  ;;  %v124_v43 = vrot.slane %v123_v39, 2  ;;  %v93_v44 = vrot.slane %v92_v40, 2 }
  0x96   :  { %v99_v45 = vrot.slane %v98_v41, 2 }
  0x97   :  { %v119_v46 = vadd.f32 %v118_v42, %v117_v38  ;;  %v125_v47 = vadd.f32 %v124_v43, %v123_v39  ;;  %v94_v48 = vadd.f32 %v93_v44, %v92_v40 }
  0x98   :  { %v100_v49 = vadd.f32 %v99_v45, %v98_v41 }
  0x99   :  { %v120_v50 = vrot.slane %v119_v46, 1  ;;  %v126_v51 = vrot.slane %v125_v47, 1  ;;  %v95_v52 = vrot.slane %v94_v48, 1 }
  0x9a   :  { %v101_v53 = vrot.slane %v100_v49, 1 }
  0x9b   :  { %v121_v54 = vadd.f32 %v120_v50, %v119_v46  ;;  %v127_v55 = vadd.f32 %v126_v51, %v125_v47  ;;  %v96_v56 = vadd.f32 %v95_v52, %v94_v48 }
  0x9c   :  { %v102_v57 = vadd.f32 %v101_v53, %v100_v49 }
  0x9d   :  { %v128_v58 = vsel %vm103_vm2, %v121_v54, 0.0  ;;  %v129_v59 = vsel %vm103_vm2, %v127_v55, 0.0  ;;  %v104_v60 = vsel %vm103_vm2, %v96_v56, 0.0 }
  0x9e   :  { %v130_v61 = vadd.f32 %v129_v59, %v128_v58  ;;  %v105_v62 = vsel %vm103_vm2, %v102_v57, 0.0 }
  0x9f   :  { %v106_v63 = vadd.f32 %v105_v62, %v104_v60 }
  0xa0   :  { %131 = vadd.xlane.f32.xlu1 %v130_v61 }
  0xa1   :  { %107 = vadd.xlane.f32.xlu0 %v106_v63 }
 0x12d   :  { %v132_v0 = vpop.xlane.xlu1 %131 }
 0x12e   :  { %v133_v1 = vrot.slane %v132_v0, 4  ;;  %v108_v2 = vpop.xlane.xlu0 %107 }
 0x12f   :  { %v109_v3 = vrot.slane %v108_v2, 4 }
 0x130   :  { %v134_v5 = vadd.f32 %v133_v1, %v132_v0 }
 0x131   :  { %v110_v6 = vadd.f32 %v109_v3, %v108_v2 }
 0x132   :  { %v135_v7 = vrot.slane %v134_v5, 2 }
 0x133   :  { %v111_v8 = vrot.slane %v110_v6, 2 }
 0x134   :  { %v136_v9 = vadd.f32 %v135_v7, %v134_v5 }
 0x135   :  { %v112_v10 = vadd.f32 %v111_v8, %v110_v6 }
 0x136   :  { %v137_v11 = vrot.slane %v136_v9, 1 }
 0x137   :  { %v113_v12 = vrot.slane %v112_v10, 1 }
 0x138   :  { %v138_v13 = vadd.f32 %v137_v11, %v136_v9 }
 0x139   :  { %v114_v14 = vadd.f32 %v113_v12, %v112_v10 }
 0x13b   :  { %164 = vpush %v114_v14 }
 0x13c   :  { %166 = vpush %v138_v13 }
 0x16c   :  { %s165_s1 = spop %164 }
 0x16d   :  { %v144_v15 = vstv %s165_s1  ;;  %s167_s2 = spop %166 }
 0x16e   :  { %v145_v17 = vstv %s167_s2 }
 0x16f   :  { %v146_v18 = vsel %vm143_vm3, %v144_v15, %v145_v17 }
 0x170   :  { %v147_v19 = vadd.f32 %v146_v18, %v142_v16 }
 0x172   :  { %148 = vst [vmem:[#allocation5] sm:$0x3] %v147_v19 }
 0x173   :  { %206 = shalt.err (!%p203_p12)
}
 0x174   :  { %s207_s7 = scalar_lea.hbm %s284_s3, 32 }
 0x175   :  { %p208_p13 = scmp.ne.s32.totalorder %s284_s3, %s207_s7  ;;  %p211_p0 = scmp.lt.u32.totalorder %s207_s7, %s284_s3 }
 0x177   :  { %p213_p1 = pnand %p211_p0, %p208_p13 }
 0x179   :  { %216 = shalt.err (!%p213_p1)
}
 0x17a   :  { %158 = dma.vmem_to_hbm [thread:$0]  %s156_s30, 32, %s284_s3, [#allocation4]  }
 0x17b   :  { %219 = dma.done.wait [#allocation4], 32  }
 0x17c   :  { %220 = vsyncadd [#allocation4], 4294967264 }
 0x17d   :  { %162 = vsyncpa [#allocation3], 1 }
 0x17e   :  { %163 = vsyncpa [#allocation4], 1 }

</bundles_post_ra>
